<compile_context>
chip_gen: v7x
topology: tpu7x:2x2x1
jax: 0.10.0
libtpu: 0.0.40
codegen_flags: <defaults>
</compile_context>

<pallas_src>
import jax
import jax.numpy as jnp
from jax import lax
from jax.experimental import pallas as pl
from jax.experimental.pallas import tpu as pltpu
import numpy as np


def _cnn_kernel(x_ref, w1_ref, b1_ref, w2_ref, b2_ref,
                fc1w_ref, fc1b_ref, fc2w_ref, fc2b_ref,
                masks_ref, avg_ref, out_ref):
    f32 = jnp.float32
    W = x_ref.shape[1]                        # padded flattened batch*time width

    x = x_ref[...]                            # (1, W)
    m_l = masks_ref[0:1, :]                   # 0 at t % L == 0       (and lane padding)
    m_r1 = masks_ref[1:2, :]                  # 0 at t % L == L - 1   (conv1 right edge)
    m_r2 = masks_ref[2:3, :]                  # 0 at t % L == L - 2   (conv2 right edge, dilated)

    # ---- conv1 (1 -> 8, k=3, pad=1) + ReLU.
    # Taps via lane rolls (XLU) + edge masks; output channels broadcast from the (8,3)
    # weight tile — pure VPU FMAs across all 8 channels at once.
    t_left = pltpu.roll(x, shift=1, axis=1) * m_l        # x[t-1] (zero pad at sample start)
    t_right = pltpu.roll(x, shift=W - 1, axis=1) * m_r1  # x[t+1] (zero pad at sample end)
    w1 = w1_ref[...]                                     # (8, 3)
    y1 = (w1[:, 0:1] * t_left + w1[:, 1:2] * x + w1[:, 2:3] * t_right
          + b1_ref[...])                                 # (8, W)
    y1 = jnp.maximum(y1, 0.0)

    # ---- MaxPool1d(2,2): roll+max; pooled values stay dilated in place (valid at t%2==0).
    p1 = jnp.maximum(y1, pltpu.roll(y1, shift=W - 1, axis=1))

    # ---- conv2 (8 -> 16, k=3, pad=1), NO ReLU (this is the "NoRelu" variant).
    # Taps on the stride-2 (dilated) grid, stacked on the sublane axis and contracted in
    # a single (16, 24) @ (24, W) MXU matmul.
    taps2 = jnp.concatenate(
        [pltpu.roll(p1, shift=2, axis=1) * m_l,          # p1[t-2]  == pooled[tp-1]
         p1,                                             # p1[t]    == pooled[tp]
         pltpu.roll(p1, shift=W - 2, axis=1) * m_r2],    # p1[t+2]  == pooled[tp+1]
        axis=0)                                          # (24, W)
    y2 = jnp.dot(w2_ref[...], taps2, preferred_element_type=f32) + b2_ref[...]  # (16, W)

    # ---- MaxPool1d(2,2) on the dilated grid: valid values now at t % 4 == 0.
    p2 = jnp.maximum(y2, pltpu.roll(y2, shift=W - 2, axis=1))

    # nn.Dropout(0.25) is identity at inference time — nothing to do.

    # ---- AdaptiveAvgPool1d(1): segmented mean over the valid lanes via one dot with a
    # host-built (W, B) matrix holding 1/(L/4) at valid pooled positions, 0 elsewhere.
    feat = jnp.dot(p2, avg_ref[...], preferred_element_type=f32)      # (16, B)

    # ---- fc1 + ReLU, fc2 (channel-major: weights @ activations; stays in vregs).
    h = jnp.maximum(jnp.dot(fc1w_ref[...], feat, preferred_element_type=f32)
                    + fc1b_ref[...], 0.0)                             # (64, B)
    out = jnp.dot(fc2w_ref[...], h, preferred_element_type=f32) + fc2b_ref[...]
    out_ref[...] = out.astype(out_ref.dtype)                          # (2, B)


def audio_classifier_forward(x, params):
    """x: (B, 1, L) float32, params in torch layout. Returns torch-style squeezed logits."""
    (w1, b1, w2, b2, fc1w, fc1b, fc2w, fc2b) = params
    B, cin, L = x.shape
    assert cin == 1 and L % 4 == 0
    c1, c2 = w1.shape[0], w2.shape[0]
    h1, nout = fc1w.shape[0], fc2w.shape[0]
    BL = B * L
    Lq = L // 4
    W = max(128, ((BL + 127) // 128) * 128)      # pad flattened lanes to 128-multiple

    x_flat = jnp.pad(x.reshape(1, BL).astype(jnp.float32), ((0, 0), (0, W - BL)))

    # ---- host-hoisted constants: conv edge masks + segmented-mean matrix ----
    pos = np.arange(W)
    t = pos % L
    valid = pos < BL
    masks = np.stack([(t != 0) & valid,          # shared left-edge mask (conv1 & conv2)
                      (t != L - 1) & valid,      # conv1 right-edge mask
                      (t != L - 2) & valid]).astype(np.float32)       # conv2 right edge (dilated)
    avg = np.zeros((W, B), np.float32)
    sel = valid & (t % 4 == 0)
    avg[pos[sel], pos[sel] // L] = 1.0 / Lq                           # (W, B)

    # conv2 weight fused over taps: columns ordered [k-major, ic-minor] to match taps2.
    w2_fused = jnp.transpose(w2, (0, 2, 1)).reshape(c2, 3 * w2.shape[1])  # (16, 24)

    vmem = pl.BlockSpec(memory_space=pltpu.MemorySpace.VMEM)

    out = pl.pallas_call(
        _cnn_kernel,
        out_shape=jax.ShapeDtypeStruct((nout, B), jnp.float32),
        in_specs=[vmem] * 11,
        out_specs=vmem,
        compiler_params=pltpu.CompilerParams(vmem_limit_bytes=32 * 1024 * 1024),
    )(x_flat,
      w1.reshape(c1, 3).astype(jnp.float32),              # conv1 weight (oc, k)
      b1.reshape(c1, 1).astype(jnp.float32),
      w2_fused.astype(jnp.float32),                       # conv2 weight (oc, k*ic)
      b2.reshape(c2, 1).astype(jnp.float32),
      fc1w.astype(jnp.float32),                           # (64, 16)
      fc1b.reshape(h1, 1).astype(jnp.float32),
      fc2w.astype(jnp.float32),                           # (2, 64)
      fc2b.reshape(nout, 1).astype(jnp.float32),
      jnp.asarray(masks), jnp.asarray(avg))

    return jnp.squeeze(out.T)                             # mirrors torch's x.squeeze()


def reference_forward(x, params):
    """Pure-JAX reference matching the PyTorch module (eval mode)."""
    (w1, b1, w2, b2, fc1w, fc1b, fc2w, fc2b) = params
    dn = ('NCH', 'OIH', 'NCH')
    y = lax.conv_general_dilated(x, w1, (1,), ((1, 1),), dimension_numbers=dn)
    y = jnp.maximum(y + b1[None, :, None], 0.0)
    B, C, L = y.shape
    y = jnp.max(y.reshape(B, C, L // 2, 2), axis=-1)
    y = lax.conv_general_dilated(y, w2, (1,), ((1, 1),), dimension_numbers=dn)
    y = y + b2[None, :, None]                             # no ReLU after conv2
    B, C, L = y.shape
    y = jnp.max(y.reshape(B, C, L // 2, 2), axis=-1)
    y = jnp.mean(y, axis=-1)                              # AdaptiveAvgPool1d(1).squeeze(-1)
    y = jnp.maximum(y @ fc1w.T + fc1b, 0.0)
    y = y @ fc2w.T + fc2b
    return jnp.squeeze(y)


if __name__ == "__main__":
    B, L = 2, 16
    key = jax.random.PRNGKey(0)
    ks = jax.random.split(key, 9)

    x = jax.random.normal(ks[0], (B, 1, L), jnp.float32)

    # deterministic synthetic parameters (shapes from the module's __init__)
    params = (
        jax.random.normal(ks[1], (8, 1, 3), jnp.float32) * 0.5,    # conv1.weight
        jax.random.normal(ks[2], (8,), jnp.float32) * 0.1,         # conv1.bias
        jax.random.normal(ks[3], (16, 8, 3), jnp.float32) * 0.2,   # conv2.weight
        jax.random.normal(ks[4], (16,), jnp.float32) * 0.1,        # conv2.bias
        jax.random.normal(ks[5], (64, 16), jnp.float32) * 0.2,     # fc1.weight
        jax.random.normal(ks[6], (64,), jnp.float32) * 0.1,        # fc1.bias
        jax.random.normal(ks[7], (2, 64), jnp.float32) * 0.2,      # fc2.weight
        jax.random.normal(ks[8], (2,), jnp.float32) * 0.1,         # fc2.bias
    )

    out = jax.block_until_ready(audio_classifier_forward(x, params))
    ref = jax.block_until_ready(reference_forward(x, params))

    err = float(jnp.max(jnp.abs(out - ref)))
    assert out.shape == ref.shape == (B, 2), (out.shape, ref.shape)
    assert err < 1e-3, f"max abs error {err}"
    print("KERNEL_OK")
</pallas_src>

<mosaic_0001>
module attributes {stable_mosaic.version = 11 : i64} {
  func.func @_cnn_kernel(%arg0: memref<1x128xf32, #tpu.memory_space<vmem>>, %arg1: memref<8x3xf32, #tpu.memory_space<vmem>>, %arg2: memref<8x1xf32, #tpu.memory_space<vmem>>, %arg3: memref<16x24xf32, #tpu.memory_space<vmem>>, %arg4: memref<16x1xf32, #tpu.memory_space<vmem>>, %arg5: memref<64x16xf32, #tpu.memory_space<vmem>>, %arg6: memref<64x1xf32, #tpu.memory_space<vmem>>, %arg7: memref<2x64xf32, #tpu.memory_space<vmem>>, %arg8: memref<2x1xf32, #tpu.memory_space<vmem>>, %arg9: memref<3x128xf32, #tpu.memory_space<vmem>>, %arg10: memref<128x2xf32, #tpu.memory_space<vmem>>, %arg11: memref<2x2xf32, #tpu.memory_space<vmem>>) attributes {dimension_semantics = [], scalar_prefetch = 0 : i64, scratch_operands = 0 : i64, tpu.core_type = #tpu.core_type<tc>} {
    %c0 = arith.constant 0 : index
    %c0_0 = arith.constant 0 : index
    %0 = vector.load %arg0[%c0, %c0_0] : memref<1x128xf32, #tpu.memory_space<vmem>>, vector<1x128xf32>
    %c0_1 = arith.constant 0 : index
    %c0_2 = arith.constant 0 : index
    %1 = vector.load %arg9[%c0_1, %c0_2] : memref<3x128xf32, #tpu.memory_space<vmem>>, vector<1x128xf32>
    %c1 = arith.constant 1 : index
    %c0_3 = arith.constant 0 : index
    %2 = vector.load %arg9[%c1, %c0_3] : memref<3x128xf32, #tpu.memory_space<vmem>>, vector<1x128xf32>
    %c2 = arith.constant 2 : index
    %c0_4 = arith.constant 0 : index
    %3 = vector.load %arg9[%c2, %c0_4] : memref<3x128xf32, #tpu.memory_space<vmem>>, vector<1x128xf32>
    %c1_i32 = arith.constant 1 : i32
    %4 = tpu.dynamic_rotate %0 by %c1_i32 dim 1 : vector<1x128xf32>, i32 -> vector<1x128xf32>
    %5 = arith.mulf %4, %1 : vector<1x128xf32>
    %c127_i32 = arith.constant 127 : i32
    %6 = tpu.dynamic_rotate %0 by %c127_i32 dim 1 : vector<1x128xf32>, i32 -> vector<1x128xf32>
    %7 = arith.mulf %6, %2 : vector<1x128xf32>
    %c0_5 = arith.constant 0 : index
    %c0_6 = arith.constant 0 : index
    %8 = vector.load %arg1[%c0_5, %c0_6] : memref<8x3xf32, #tpu.memory_space<vmem>>, vector<8x3xf32>
    %9 = vector.extract_strided_slice %8 {offsets = [0, 0], sizes = [8, 1], strides = [1, 1]} : vector<8x3xf32> to vector<8x1xf32>
    %10 = vector.broadcast %9 : vector<8x1xf32> to vector<8x128xf32>
    %11 = vector.broadcast %5 : vector<1x128xf32> to vector<8x128xf32>
    %12 = arith.mulf %10, %11 : vector<8x128xf32>
    %13 = vector.extract_strided_slice %8 {offsets = [0, 1], sizes = [8, 1], strides = [1, 1]} : vector<8x3xf32> to vector<8x1xf32>
    %14 = vector.broadcast %13 : vector<8x1xf32> to vector<8x128xf32>
    %15 = vector.broadcast %0 : vector<1x128xf32> to vector<8x128xf32>
    %16 = arith.mulf %14, %15 : vector<8x128xf32>
    %17 = arith.addf %12, %16 : vector<8x128xf32>
    %18 = vector.extract_strided_slice %8 {offsets = [0, 2], sizes = [8, 1], strides = [1, 1]} : vector<8x3xf32> to vector<8x1xf32>
    %19 = vector.broadcast %18 : vector<8x1xf32> to vector<8x128xf32>
    %20 = vector.broadcast %7 : vector<1x128xf32> to vector<8x128xf32>
    %21 = arith.mulf %19, %20 : vector<8x128xf32>
    %22 = arith.addf %17, %21 : vector<8x128xf32>
    %c0_7 = arith.constant 0 : index
    %c0_8 = arith.constant 0 : index
    %23 = vector.load %arg2[%c0_7, %c0_8] : memref<8x1xf32, #tpu.memory_space<vmem>>, vector<8x1xf32>
    %24 = vector.broadcast %23 : vector<8x1xf32> to vector<8x128xf32>
    %25 = arith.addf %22, %24 : vector<8x128xf32>
    %cst = arith.constant 0.000000e+00 : f32
    %26 = vector.broadcast %cst : f32 to vector<8x128xf32>
    %27 = arith.maximumf %25, %26 : vector<8x128xf32>
    %c127_i32_9 = arith.constant 127 : i32
    %28 = tpu.dynamic_rotate %27 by %c127_i32_9 dim 1 : vector<8x128xf32>, i32 -> vector<8x128xf32>
    %29 = arith.maximumf %27, %28 : vector<8x128xf32>
    %c2_i32 = arith.constant 2 : i32
    %30 = tpu.dynamic_rotate %29 by %c2_i32 dim 1 : vector<8x128xf32>, i32 -> vector<8x128xf32>
    %31 = vector.broadcast %1 : vector<1x128xf32> to vector<8x128xf32>
    %32 = arith.mulf %30, %31 : vector<8x128xf32>
    %c126_i32 = arith.constant 126 : i32
    %33 = tpu.dynamic_rotate %29 by %c126_i32 dim 1 : vector<8x128xf32>, i32 -> vector<8x128xf32>
    %34 = vector.broadcast %3 : vector<1x128xf32> to vector<8x128xf32>
    %35 = arith.mulf %33, %34 : vector<8x128xf32>
    %36 = tpu.concatenate %32, %29, %35 in 0 : vector<8x128xf32>, vector<8x128xf32>, vector<8x128xf32> -> vector<24x128xf32>
    %c0_10 = arith.constant 0 : index
    %c0_11 = arith.constant 0 : index
    %37 = vector.load %arg3[%c0_10, %c0_11] : memref<16x24xf32, #tpu.memory_space<vmem>>, vector<16x24xf32>
    %cst_12 = arith.constant dense<0.000000e+00> : vector<16x128xf32>
    %38 = tpu.matmul %37, %36, %cst_12 {dimension_numbers = #tpu.dot_dimension_numbers<[1], [0], [0], [1], [0, 0, 1, 1], [], []>} : vector<16x24xf32>, vector<24x128xf32>, vector<16x128xf32> -> vector<16x128xf32>
    %c0_13 = arith.constant 0 : index
    %c0_14 = arith.constant 0 : index
    %39 = vector.load %arg4[%c0_13, %c0_14] : memref<16x1xf32, #tpu.memory_space<vmem>>, vector<16x1xf32>
    %40 = vector.broadcast %39 : vector<16x1xf32> to vector<16x128xf32>
    %41 = arith.addf %38, %40 : vector<16x128xf32>
    %c126_i32_15 = arith.constant 126 : i32
    %42 = tpu.dynamic_rotate %41 by %c126_i32_15 dim 1 : vector<16x128xf32>, i32 -> vector<16x128xf32>
    %43 = arith.maximumf %41, %42 : vector<16x128xf32>
    %c0_16 = arith.constant 0 : index
    %c0_17 = arith.constant 0 : index
    %44 = vector.load %arg10[%c0_16, %c0_17] : memref<128x2xf32, #tpu.memory_space<vmem>>, vector<128x2xf32>
    %cst_18 = arith.constant dense<0.000000e+00> : vector<16x2xf32>
    %45 = tpu.matmul %43, %44, %cst_18 {dimension_numbers = #tpu.dot_dimension_numbers<[1], [0], [0], [1], [0, 0, 1, 1], [], []>} : vector<16x128xf32>, vector<128x2xf32>, vector<16x2xf32> -> vector<16x2xf32>
    %c0_19 = arith.constant 0 : index
    %c0_20 = arith.constant 0 : index
    %46 = vector.load %arg5[%c0_19, %c0_20] : memref<64x16xf32, #tpu.memory_space<vmem>>, vector<64x16xf32>
    %cst_21 = arith.constant dense<0.000000e+00> : vector<64x2xf32>
    %47 = tpu.matmul %46, %45, %cst_21 {dimension_numbers = #tpu.dot_dimension_numbers<[1], [0], [0], [1], [0, 0, 1, 1], [], []>} : vector<64x16xf32>, vector<16x2xf32>, vector<64x2xf32> -> vector<64x2xf32>
    %c0_22 = arith.constant 0 : index
    %c0_23 = arith.constant 0 : index
    %48 = vector.load %arg6[%c0_22, %c0_23] : memref<64x1xf32, #tpu.memory_space<vmem>>, vector<64x1xf32>
    %49 = vector.broadcast %48 : vector<64x1xf32> to vector<64x2xf32>
    %50 = arith.addf %47, %49 : vector<64x2xf32>
    %cst_24 = arith.constant 0.000000e+00 : f32
    %51 = vector.broadcast %cst_24 : f32 to vector<64x2xf32>
    %52 = arith.maximumf %50, %51 : vector<64x2xf32>
    %c0_25 = arith.constant 0 : index
    %c0_26 = arith.constant 0 : index
    %53 = vector.load %arg7[%c0_25, %c0_26] : memref<2x64xf32, #tpu.memory_space<vmem>>, vector<2x64xf32>
    %cst_27 = arith.constant dense<0.000000e+00> : vector<2x2xf32>
    %54 = tpu.matmul %53, %52, %cst_27 {dimension_numbers = #tpu.dot_dimension_numbers<[1], [0], [0], [1], [0, 0, 1, 1], [], []>} : vector<2x64xf32>, vector<64x2xf32>, vector<2x2xf32> -> vector<2x2xf32>
    %c0_28 = arith.constant 0 : index
    %c0_29 = arith.constant 0 : index
    %55 = vector.load %arg8[%c0_28, %c0_29] : memref<2x1xf32, #tpu.memory_space<vmem>>, vector<2x1xf32>
    %56 = vector.broadcast %55 : vector<2x1xf32> to vector<2x2xf32>
    %57 = arith.addf %54, %56 : vector<2x2xf32>
    %c0_30 = arith.constant 0 : index
    %c0_31 = arith.constant 0 : index
    %58 = vector.load %arg11[%c0_30, %c0_31] : memref<2x2xf32, #tpu.memory_space<vmem>>, vector<2x2xf32>
    tpu.vector_store %arg11[%c0_30, %c0_31], %57 {strides = array<i32>} : memref<2x2xf32, #tpu.memory_space<vmem>>, vector<2x2xf32>,
    return
  }
}

</mosaic_0001>

<bundles_post_ra>
// kernel: tpu_custom_call.1
= control target key start
LH: loop header
LB: loop body
LE: loop exit
PB: predicated region body
PF: predicated region fallthrough
CT: control target
= control target key end

     0   :  { %v821_v1 = vmov 2   ;;  %v822_v2 = vmov 0   ;;  %s1048_s0 = inlined_call_operand.vmem [shape: f32[1,128], index: 0, kind: input, shape index: {}]   ;;  %s1049_s1 = inlined_call_operand.vmem [shape: f32[8,3], index: 1, kind: input, shape index: {}]   ;;  %s1050_s2 = inlined_call_operand.vmem [shape: f32[8,1], index: 2, kind: input, shape index: {}]   ;;  %s1051_s3 = inlined_call_operand.vmem [shape: f32[16,24], index: 3, kind: input, shape index: {}]   ;;  %s1052_s4 = inlined_call_operand.vmem [shape: f32[16,1], index: 4, kind: input, shape index: {}]   ;;  %s1053_s5 = inlined_call_operand.vmem [shape: f32[64,16], index: 5, kind: input, shape index: {}]   ;;  %s1054_s6 = inlined_call_operand.vmem [shape: f32[64,1], index: 6, kind: input, shape index: {}]   ;;  %s1055_s7 = inlined_call_operand.vmem [shape: f32[2,64], index: 7, kind: input, shape index: {}]   ;;  %s1056_s8 = inlined_call_operand.vmem [shape: f32[2,1], index: 8, kind: input, shape index: {}]   ;;  %s1057_s9 = inlined_call_operand.vmem [shape: f32[3,128], index: 9, kind: input, shape index: {}]   ;;  %s1058_s10 = inlined_call_operand.vmem [shape: f32[128,2], index: 10, kind: input, shape index: {}]   ;;  %s1059_s11 = inlined_call_operand.hbm [shape: f32[2,2], index: 11, kind: output, shape index: {}]  }
   0x1   :  { %v49_v0 = vld [vmem:[%s1049_s1] sm:$0xff]  ;;  %789 = vset.pattern.permute.xlu1 %v821_v1  ;;  %787 = vset.pattern.permute.xlu0 %v822_v2 }
   0x2   :  { %73 = vperm.xlu1 %789, %v49_v0   ;;  %52 = vperm.xlu0 %787, %v49_v0  }
   0x3   :  { %16 = vsyncpa [#allocation3], 0  ;;  %v39_v3 = vld [vmem:[%s1048_s0] sm:$0x1]  ;;  %v823_v4 = vmov 1   ;;  %s824_s21 = smov 1   ;;  %v55_v6 = vlaneseq }
   0x4   :  { %v82_v5 = vld [vmem:[%s1050_s2] sm:$0xff]  ;;  %s825_s1 = smov 127   ;;  %vm121_vm0 = vcmask 195584   ;;  %s826_s28 = smov 126   ;;  %v110_v32 = vld [vmem:[%s1052_s4 + $0x8] sm:$0xff]  ;;  %v310_v34 = vld [vmem:[%s1054_s6 + $0x10] sm:$0xff] }
   0x5   :  { %v56_v7 = vshrl.u32 %v55_v6, 7  ;;  %v40_v11 = vld [vmem:[%s1057_s9] sm:$0x1]  ;;  %v41_v16 = vld [vmem:[%s1057_s9 + $0x1] sm:$0x1]  ;;  %s827_s29 = smov 2  }
   0x6   :  { %788 = vset.pattern.permute.xlu0 %v823_v4  ;;  %43 = vrot.lane.b32.xlu1 %v39_v3, %s824_s21  ;;  %v107_v29 = vld [vmem:[%s1051_s3] sm:$0xff]  ;;  %v314_v36 = vld [vmem:[%s1054_s6 + $0x30] sm:$0xff]  ;;  %v108_v46 = vld [vmem:[%s1051_s3 + $0x8] sm:$0xff]  ;;  %vm356_vm1 = vcmask 130048   ;;  %vm829_vm2 = vmmov 0   ;;  %vm501_vm3 = vcmask 523264  }
   0x7   :  { %61 = vperm.xlu0 %788, %v49_v0   ;;  %791 = vset.pattern.permute.xlu1 %v822_v2  ;;  %v57_v10 = vsub.s32 0, %v56_v7  ;;  %v308_v33 = vld [vmem:[%s1054_s6] sm:$0xff]  ;;  %v210_v48 = vld [vmem:[%s1058_s10 + $0x8] sm:$0xff]  ;;  %v211_v49 = vld [vmem:[%s1058_s10 + $0x10] sm:$0xff]  ;;  %vm575_vm4 = vcmask 9216  }
   0x8   :  { %651 = vmatprep.mubr.msk.f32.mxu0 %vm121_vm0, %v107_v29  ;;  %v312_v35 = vld [vmem:[%s1054_s6 + $0x20] sm:$0xff]  ;;  %v212_v51 = vld [vmem:[%s1058_s10 + $0x18] sm:$0xff]  ;;  %v214_v54 = vld [vmem:[%s1058_s10 + $0x28] sm:$0xff] }
   0x9   :  { %v68_v14 = vrot.slane %v39_v3, %v57_v10  ;;  %v495_v37 = vld [vmem:[%s1056_s8] sm:$0x3]  ;;  %v98_v39 = vrot.slane %v40_v11, %v57_v10  ;;  %v591_v42 = vld [vmem:[%s1057_s9 + $0x2] ss:$0 sm:$0xff]  ;;  %v732_v52 = vpack.c.bf16 %v212_v51, %v211_v49  ;;  %v215_v56 = vld [vmem:[%s1058_s10 + $0x30] sm:$0xff]  ;;  %s831_s9 = smov [#allocation2]  }
   0xa   :  { %46 = vrot.lane.b32.xlu1 %v39_v3, %s825_s1  ;;  %v109_v38 = vld [vmem:[%s1052_s4] sm:$0xff]  ;;  %v216_v57 = vld [vmem:[%s1058_s10 + $0x38] sm:$0xff]  ;;  %v218_v60 = vld [vmem:[%s1058_s10 + $0x48] sm:$0xff] }
   0xb   :  { %790 = vset.pattern.permute.xlu0 %v822_v2  ;;  %v209_v47 = vld [vmem:[%s1058_s10] sm:$0xff]  ;;  %v740_v58 = vpack.c.bf16 %v216_v57, %v215_v56  ;;  %v219_v62 = vld [vmem:[%s1058_s10 + $0x50] sm:$0xff]  ;;  %v220_v63 = vld [vmem:[%s1058_s10 + $0x58] sm:$0xff] }
   0xc   :  { %85 = vperm.xlu0 %790, %v82_v5   ;;  %v728_v50 = vpack.c.bf16 %v210_v48, %v209_v47  ;;  %v213_v53 = vld [vmem:[%s1058_s10 + $0x20] sm:$0xff]  ;;  %v748_v0 = vpack.c.bf16 %v220_v63, %v219_v62  ;;  %v222_v2 = vld [vmem:[%s1058_s10 + $0x68] sm:$0xff]  ;;  %v223_v4 = vld [vmem:[%s1058_s10 + $0x70] sm:$0xff] }
   0xd   :  { %v736_v55 = vpack.c.bf16 %v214_v54, %v213_v53  ;;  %v217_v59 = vld [vmem:[%s1058_s10 + $0x40] sm:$0xff]  ;;  %v224_v5 = vld [vmem:[%s1058_s10 + $0x78] sm:$0xff] }
   0xe   :  { %729 = vmatprep.subr.bf16.mxu1 %v728_v50  ;;  %v744_v61 = vpack.c.bf16 %v218_v60, %v217_v59  ;;  %v221_v1 = vld [vmem:[%s1058_s10 + $0x60] sm:$0xff]  ;;  %v756_v6 = vpack.c.bf16 %v224_v5, %v223_v4  ;;  %v303_v29 = vld [vmem:[%s1053_s5 + $0x18] sm:$0xff] }
   0xf   :  { %731 = vmatpush3.bf16.msra.mxu1 %v728_v50  ;;  %v752_v3 = vpack.c.bf16 %v222_v2, %v221_v1 }
  0x10   :  { %733 = vmatprep.subr.bf16.mxu1 %v732_v52 }
  0x13   :  { %735 = vmatpush3.bf16.msra.mxu1 %v732_v52 }
  0x14   :  { %737 = vmatprep.subr.bf16.mxu1 %v736_v55 }
  0x17   :  { %739 = vmatpush3.bf16.msra.mxu1 %v736_v55 }
  0x18   :  { %741 = vmatprep.subr.bf16.mxu1 %v740_v58 }
  0x1b   :  { %743 = vmatpush3.bf16.msra.mxu1 %v740_v58 }
  0x1c   :  { %745 = vmatprep.subr.bf16.mxu1 %v744_v61 }
  0x1f   :  { %747 = vmatpush3.bf16.msra.mxu1 %v744_v61 }
  0x20   :  { %749 = vmatprep.subr.bf16.mxu1 %v748_v0 }
  0x23   :  { %751 = vmatpush3.bf16.msra.mxu1 %v748_v0 }
  0x24   :  { %753 = vmatprep.subr.bf16.mxu1 %v752_v3 }
  0x27   :  { %755 = vmatpush3.bf16.msra.mxu1 %v752_v3 }
  0x28   :  { %757 = vmatprep.subr.bf16.mxu1 %v756_v6 }
  0x2b   :  { %759 = vmatpush3.bf16.msra.mxu1 %v756_v6 }
  0x81   :  { %v74_v8 = vpop.permute.xlu1 %73  ;;  %v53_v9 = vpop.permute.xlu0 %52 }
  0x85   :  { %v44_v12 = vpop.permute.xlu1 %43 }
  0x86   :  { %v45_v13 = vmul.f32 %v44_v12, %v40_v11  ;;  %v62_v15 = vpop.permute.xlu0 %61 }
  0x87   :  { %v70_v20 = vmul.f32 %v68_v14, %v62_v15  ;;  %v309_v14 = vld [vmem:[%s1054_s6 + $0x8] sm:$0xff]  ;;  %v311_v15 = vld [vmem:[%s1054_s6 + $0x18] sm:$0xff] }
  0x88   :  { %v58_v17 = vrot.slane %v45_v13, %v57_v10 }
  0x89   :  { %v47_v18 = vpop.permute.xlu1 %46 }
  0x8a   :  { %v59_v19 = vmul.f32 %v58_v17, %v53_v9  ;;  %v48_v21 = vmul.f32 %v47_v18, %v41_v16  ;;  %v313_v16 = vld [vmem:[%s1054_s6 + $0x28] sm:$0xff]  ;;  %v315_v17 = vld [vmem:[%s1054_s6 + $0x38] sm:$0xff] }
  0x8b   :  { %v86_v25 = vpop.permute.xlu0 %85 }
  0x8c   :  { %v79_v22 = vrot.slane %v48_v21, %v57_v10  ;;  %v71_v23 = vadd.f32 %v70_v20, %v59_v19 }
  0x8e   :  { %v80_v24 = vmul.f32 %v79_v22, %v74_v8 }
  0x90   :  { %v81_v26 = vadd.f32 %v80_v24, %v71_v23  ;;  %v300_v23 = vld [vmem:[%s1053_s5] sm:$0xff] }
  0x92   :  { %v88_v27 = vadd.f32 %v86_v25, %v81_v26 }
  0x94   :  { %v89_v28 = vmax.f32 %v88_v27, 0.0  ;;  %v301_v27 = vld [vmem:[%s1053_s5 + $0x8] sm:$0xff] }
  0x96   :  { %90 = vrot.lane.b32.xlu1 %v89_v28, %s825_s1 }
 0x108   :  { %v91_v30 = vpop.permute.xlu1 %90 }
 0x109   :  { %v92_v31 = vmax.f32 %v89_v28, %v91_v30  ;;  %v302_v28 = vld [vmem:[%s1053_s5 + $0x10] sm:$0xff]  ;;  %v304_v30 = vld [vmem:[%s1053_s5 + $0x20] sm:$0xff] }
 0x10b   :  { %100 = vrot.lane.b32.xlu0 %v92_v31, %s826_s28  ;;  %93 = vrot.lane.b32.xlu1 %v92_v31, %s827_s29  ;;  %s583_s29 = sshll.u32 %s831_s9, 4  ;;  %s584_s29 = int_to_ptr.vmem [resolvable:$true] %s583_s29 }
 0x10c   :  { %s797_s30 = scalar_lea.vmem %s584_s29, 32  ;;  %p802_p1 = scmp.lt.s32.totalorder %s584_s29, %s584_s29 }
 0x10d   :  { %p798_p0 = scmp.ne.s32.totalorder %s584_s29, %s797_s30  ;;  %p803_p2 = scmp.lt.s32.totalorder %s797_s30, %s797_s30 }
 0x10f   :  { %118 = vperm.xlu0 %790, %v110_v32   ;;  %113 = vperm.xlu1 %791, %v109_v38   ;;  %v306_v32 = vld [vmem:[%s1053_s5 + $0x30] sm:$0xff]  ;;  %p804_p3 = por %p803_p2, %p802_p1 }
 0x111   :  { %p805_p4 = pnand %p804_p3, %p798_p0 }
 0x113   :  { %318 = vperm.xlu0 %790, %v308_v33   ;;  %v307_v33 = vld [vmem:[%s1053_s5 + $0x38] sm:$0xff] }
 0x117   :  { %328 = vperm.xlu0 %790, %v310_v34   ;;  %v828_v34 = vmov 0.0|0.0  }
 0x11b   :  { %338 = vperm.xlu0 %790, %v312_v35   ;;  %v830_v35 = vmov 0.0  }
 0x11f   :  { %348 = vperm.xlu0 %790, %v314_v36  }
 0x123   :  { %498 = vperm.xlu0 %790, %v495_v37  }
 0x17d   :  { %v94_v40 = vpop.permute.xlu1 %93  ;;  %v101_v43 = vpop.permute.xlu0 %100 }
 0x17e   :  { %v99_v41 = vmul.f32 %v98_v39, %v94_v40  ;;  %v106_v45 = vmul.f32 %v591_v42, %v101_v43 }
 0x180   :  { %v724_v44 = vpack.c.bf16 %v92_v31, %v99_v41  ;;  %v305_v31 = vld [vmem:[%s1053_s5 + $0x28] sm:$0xff] }
 0x182   :  { %725 = vmatprep.subr.bf16.mxu0 %v724_v44 }
 0x183   :  { %727 = vmatpush3.bf16.msra.mxu0 %v724_v44 }
 0x184   :  { %649 = vmatprep.subr.mxu0 %v106_v45 }
 0x187   :  { %650 = vmatpush3.msra.mxu0 %v106_v45 }
 0x188   :  { %652 = vmatmul.mubr.msk.f32.vlgmr.msra.gmra.mrb[0].mxu0 %vm121_vm0, %v108_v46 }
 0x189   :  { %693 = vmatprep.mubr.msk.f32.mxu0 %vm356_vm1, %v300_v23 }
 0x18e   :  { %v114_v7 = vpop.permute.xlu1 %113  ;;  %v119_v8 = vpop.permute.xlu0 %118 }
 0x192   :  { %v319_v37 = vpop.permute.xlu0 %318 }
 0x196   :  { %v329_v40 = vpop.permute.xlu0 %328 }
 0x19a   :  { %v339_v52 = vpop.permute.xlu0 %338 }
 0x19e   :  { %v349_v0 = vpop.permute.xlu0 %348 }
 0x25b   :  { %v653_v9 = vpop.f32.mrb[0].mxu0 }
 0x25c   :  { %v200_v10 = vadd.f32 %v653_v9, %v119_v8  ;;  %v194_v11 = vpop.f32.mrb[1].mxu0  ;;  %v494_v8 = vld [vmem:[%s1055_s7] sm:$0x3]  ;;  %v499_v9 = vpop.permute.xlu0 %498 }
 0x25d   :  { %v195_v12 = vadd.f32 %v194_v11, %v114_v7 }
 0x25f   :  { %v792_v13 = vpack.i.bf16 %v200_v10, %v195_v12 }
 0x261   :  { %793 = vrot.lane.b32.xlu1 %v792_v13, %s826_s28 }
 0x265   :  { %323 = vperm.xlu1 %791, %v309_v14  }
 0x269   :  { %333 = vperm.xlu1 %791, %v311_v15  }
 0x26d   :  { %343 = vperm.xlu1 %791, %v313_v16  }
 0x271   :  { %353 = vperm.xlu1 %791, %v315_v17  }
 0x2d3   :  { %v794_v18 = vpop.permute.xlu1 %793 }
 0x2d4   :  { %v796_v19 = vunpack.i.h.bf16 %v794_v18  ;;  %v795_v20 = vunpack.i.l.bf16 %v794_v18 }
 0x2d6   :  { %v208_v21 = vmax.f32 %v200_v10, %v796_v19  ;;  %v207_v22 = vmax.f32 %v195_v12, %v795_v20 }
 0x2d8   :  { %686 = vmatprep.mubr.f32.mxu1 %v207_v22 }
 0x2d9   :  { %687 = vmatmul.mubr.f32.vlgmr.msra.gmra.mrb[0].mxu1 %v208_v21 }
 0x2e4   :  { %v324_v36 = vpop.permute.xlu1 %323 }
 0x2e8   :  { %v334_v38 = vpop.permute.xlu1 %333 }
 0x2ec   :  { %v344_v49 = vpop.permute.xlu1 %343 }
 0x2f0   :  { %v354_v61 = vpop.permute.xlu1 %353 }
 0x3ac   :  { %v688_v24 = vpop.f32.mrb[0].mxu1 }
 0x3ad   :  { %v291_v25 = vpop.f32.mrb[1].mxu1 }
 0x3ae   :  { %v760_v26 = vpack.c.bf16 %v688_v24, %v291_v25 }
 0x3b0   :  { %761 = vmatprep.subr.bf16.mxu0 %v760_v26 }
 0x3b1   :  { %763 = vmatpush3.bf16.msra.mxu0 %v760_v26 }
 0x3b2   :  { %764 = vmatprep.subr.bf16.mxu0 %v828_v34 }
 0x3b4   :  { %694 = vmatmul.mubr.msk.f32.vlgmr.msra.gmra.mrb[2].mxu0 %vm356_vm1, %v301_v27 }
 0x3b5   :  { %696 = vmatprep.mubr.msk.f32.mxu0 %vm356_vm1, %v302_v28 }
 0x3b8   :  { %697 = vmatmul.mubr.msk.f32.gmra.mrb[4].mxu0 %vm356_vm1, %v303_v29 }
 0x3b9   :  { %699 = vmatprep.mubr.msk.f32.mxu0 %vm356_vm1, %v304_v30 }
 0x3bc   :  { %700 = vmatmul.mubr.msk.f32.gmra.mrb[6].mxu0 %vm356_vm1, %v305_v31 }
 0x3bd   :  { %702 = vmatprep.mubr.msk.f32.mxu0 %vm356_vm1, %v306_v32 }
 0x3c0   :  { %703 = vmatmul.mubr.msk.f32.gmra.mrb[8].mxu0 %vm356_vm1, %v307_v33 }
 0x3c1   :  { %721 = vmatprep.mubr.msk.f32.mxu0 %vm829_vm2, %v830_v35 }
 0x487   :  { %v695_v39 = vpop.f32.mrb[2].mxu0 }
 0x488   :  { %v453_v41 = vadd.f32 %v695_v39, %v324_v36  ;;  %v447_v42 = vpop.f32.mrb[3].mxu0 }
 0x489   :  { %v448_v43 = vadd.f32 %v447_v42, %v319_v37 }
 0x48a   :  { %v487_v44 = vmax.f32 %v453_v41, 0.0 }
 0x48b   :  { %v486_v45 = vmax.f32 %v448_v43, 0.0  ;;  %v698_v46 = vpop.f32.mrb[4].mxu0 }
 0x48c   :  { %v463_v47 = vadd.f32 %v698_v46, %v334_v38  ;;  %v457_v48 = vpop.f32.mrb[5].mxu0 }
 0x48d   :  { %v765_v50 = vpack.c.bf16 %v487_v44, %v486_v45  ;;  %v458_v51 = vadd.f32 %v457_v48, %v329_v40 }
 0x48e   :  { %v489_v53 = vmax.f32 %v463_v47, 0.0 }
 0x48f   :  { %v488_v54 = vmax.f32 %v458_v51, 0.0  ;;  %v701_v55 = vpop.f32.mrb[6].mxu0  ;;  %766 = vmatpush3.bf16.msra.mxu0 %v765_v50 }
 0x490   :  { %v473_v56 = vadd.f32 %v701_v55, %v344_v49  ;;  %v467_v57 = vpop.f32.mrb[7].mxu0  ;;  %767 = vmatprep.subr.bf16.mxu0 %v828_v34 }
 0x491   :  { %v768_v58 = vpack.c.bf16 %v489_v53, %v488_v54  ;;  %v468_v59 = vadd.f32 %v467_v57, %v339_v52 }
 0x492   :  { %v491_v60 = vmax.f32 %v473_v56, 0.0 }
 0x493   :  { %v490_v62 = vmax.f32 %v468_v59, 0.0  ;;  %v704_v63 = vpop.f32.mrb[8].mxu0  ;;  %769 = vmatpush3.bf16.msra.mxu0 %v768_v58 }
 0x494   :  { %v483_v1 = vadd.f32 %v704_v63, %v354_v61  ;;  %v477_v2 = vpop.f32.mrb[9].mxu0  ;;  %770 = vmatprep.subr.bf16.mxu0 %v828_v34 }
 0x495   :  { %v771_v3 = vpack.c.bf16 %v491_v60, %v490_v62  ;;  %v478_v4 = vadd.f32 %v477_v2, %v349_v0 }
 0x496   :  { %v493_v5 = vmax.f32 %v483_v1, 0.0 }
 0x497   :  { %v492_v6 = vmax.f32 %v478_v4, 0.0  ;;  %772 = vmatpush3.bf16.msra.mxu0 %v771_v3 }
 0x498   :  { %773 = vmatprep.subr.bf16.mxu0 %v828_v34 }
 0x499   :  { %v774_v7 = vpack.c.bf16 %v493_v5, %v492_v6 }
 0x49b   :  { %775 = vmatpush3.bf16.msra.mxu0 %v774_v7 }
 0x49e   :  { %722 = vmatmul.mubr.msk.f32.vlgmr.msra.gmra.mrb[10].mxu0 %vm501_vm3, %v494_v8 }
 0x571   :  { %v571_v10 = vpop.f32.mrb[10].mxu0 }
 0x572   :  { %v572_v11 = vadd.f32 %v571_v10, %v499_v9  ;;  %v723_v12 = vpop.f32.mrb[11].mxu0 }
 0x574   :  { %576 = vst.msk [vmem:[#allocation2] sm:$0x3] %vm575_vm4, %v572_v11 }
 0x575   :  { %808 = shalt.err (!%p805_p4)
}
 0x576   :  { %s809_s3 = scalar_lea.hbm %s1059_s11, 32 }
 0x577   :  { %p810_p5 = scmp.ne.s32.totalorder %s1059_s11, %s809_s3  ;;  %p813_p6 = scmp.lt.u32.totalorder %s809_s3, %s1059_s11 }
 0x579   :  { %p815_p7 = pnand %p813_p6, %p810_p5 }
 0x57b   :  { %818 = shalt.err (!%p815_p7)
}
 0x57c   :  { %586 = dma.vmem_to_hbm [thread:$0]  %s584_s29, 32, %s1059_s11, [#allocation3]  }
 0x57d   :  { %819 = dma.done.wait [#allocation3], 32  }
 0x57e   :  { %820 = vsyncadd [#allocation3], 4294967264 }
 0x57f   :  { %590 = vsyncpa [#allocation3], 1 }

</bundles_post_ra>
